<compile_context>
chip_gen: v5e
topology: v5e:2x2
jax: 0.10.0
libtpu: 0.0.40
codegen_flags: <defaults>
</compile_context>

<pallas_src>
import functools

import jax
import jax.numpy as jnp
from jax.experimental import pallas as pl
from jax.experimental.pallas import tpu as pltpu


_MIB = 1 << 20
# Conservative, generation-safe budgets (fit v5e scoped VMEM once raised, and
# v7x's 64 MiB physical VMEM with margin).
_FUSED_SLAB_BYTES = 4 * _MIB    # per-batch (C, HW) slab budget for 1-pass path
_POOL_TILE_BYTES = 8 * _MIB     # pass 1 streams the input only
_SCALE_TILE_BYTES = 4 * _MIB    # pass 2 double-buffers input + output


def _se_mlp(p, w1t_ref, b1_ref, w2t_ref, b2_ref):
    """p: (C, 1) f32 pooled means -> (C, 1) f32 channel scales (tiny MXU work)."""
    h = jnp.dot(w1t_ref[...], p,
                preferred_element_type=jnp.float32,
                precision=jax.lax.Precision.HIGHEST) + b1_ref[...]     # (Cr, 1)
    h = jnp.maximum(h, 0.0)
    s = jnp.dot(w2t_ref[...], h,
                preferred_element_type=jnp.float32,
                precision=jax.lax.Precision.HIGHEST) + b2_ref[...]     # (C, 1)
    return jax.nn.sigmoid(s)


def _fused_kernel(x_ref, w1t_ref, b1_ref, w2t_ref, b2_ref, o_ref, *, inv_hw):
    # One batch slab (1, C, HWp) resident in VMEM: pool + MLP + rescale fused.
    p = jnp.sum(x_ref[0].astype(jnp.float32), axis=-1, keepdims=True) * inv_hw
    s = _se_mlp(p, w1t_ref, b1_ref, w2t_ref, b2_ref)                    # (C, 1)
    o_ref[0] = (x_ref[0].astype(jnp.float32) * s).astype(o_ref.dtype)


def _pool_se_kernel(x_ref, w1t_ref, b1_ref, w2t_ref, b2_ref, s_ref, *, inv_hw):
    # x_ref: (1, C, T) HW tile; s_ref: (1, C, 1) f32, VMEM-resident across the
    # (arbitrary) HW-tile axis.  Used as the sum accumulator, then overwritten
    # with the SE channel scales in the finalize branch.
    t = pl.program_id(1)

    @pl.when(t == 0)
    def _():
        s_ref[...] = jnp.zeros_like(s_ref)

    s_ref[...] += jnp.sum(x_ref[0].astype(jnp.float32), axis=-1,
                          keepdims=True)[None]                          # (1,C,1)

    @pl.when(t == pl.num_programs(1) - 1)
    def _():
        p = s_ref[0] * inv_hw                                           # mean
        s_ref[0] = _se_mlp(p, w1t_ref, b1_ref, w2t_ref, b2_ref)


def _scale_kernel(x_ref, s_ref, o_ref):
    # x_ref: (1, C, T); s_ref: (1, C, 1) f32; o_ref: (1, C, T).  f32 multiply,
    # cast on the lane-dense store.
    o_ref[0] = (x_ref[0].astype(jnp.float32) * s_ref[0]).astype(o_ref.dtype)


def _pick_hw_tile(hw_pad, c, itemsize, max_tile_bytes):
    """Largest multiple of 128 dividing hw_pad with a <= max_tile_bytes tile."""
    max_lanes = max(128, (max_tile_bytes // (c * itemsize)) // 128 * 128)
    t = min(hw_pad, max_lanes)
    while hw_pad % t:
        t -= 128
    return t


def ca_layer(x_nchw, w1, b1, w2, b2, *, fused_slab_bytes=_FUSED_SLAB_BYTES):
    """Channel attention: x * sigmoid(W2 @ relu(W1 @ mean_hw(x) + b1) + b2).

    x_nchw: (B, C, H, W).  w1: (C, Cr), b1: (Cr,), w2: (Cr, C), b2: (C,)
    (the (in, out) linear equivalents of the PyTorch 1x1 convs).
    """
    B, C, H, W = x_nchw.shape
    Cr = w1.shape[1]
    HW = H * W
    HW_pad = -(-HW // 128) * 128                    # lane-align HW
    dtype = x_nchw.dtype
    itemsize = jnp.dtype(dtype).itemsize

    x = x_nchw.reshape(B, C, HW)                    # NCHW-native: view only
    if HW_pad != HW:
        x = jnp.pad(x, ((0, 0), (0, 0), (0, HW_pad - HW)))

    # Tiny weight reshapes done once so the in-kernel MLP is two plain matvecs.
    w1t = w1.T.astype(jnp.float32)                  # (Cr, C)
    w2t = w2.T.astype(jnp.float32)                  # (C, Cr)
    b1c = b1.reshape(Cr, 1).astype(jnp.float32)
    b2c = b2.reshape(C, 1).astype(jnp.float32)

    inv_hw = 1.0 / HW                               # divide by the true HW
    slab_bytes = C * HW_pad * itemsize
    slab_f32 = C * HW_pad * 4

    # Weight BlockSpecs: full-extent blocks, constant index maps (DMA'd once).
    wspecs = [
        pl.BlockSpec((Cr, C), lambda *_: (0, 0)),
        pl.BlockSpec((Cr, 1), lambda *_: (0, 0)),
        pl.BlockSpec((C, Cr), lambda *_: (0, 0)),
        pl.BlockSpec((C, 1), lambda *_: (0, 0)),
    ]

    if slab_bytes <= fused_slab_bytes:
        # ---- fully fused single pass: one HBM read + one HBM write ----
        vmem_limit = max(4 * slab_bytes + slab_f32 + 2 * _MIB, 32 * _MIB)
        out = pl.pallas_call(
            functools.partial(_fused_kernel, inv_hw=inv_hw),
            out_shape=jax.ShapeDtypeStruct((B, C, HW_pad), dtype),
            grid_spec=pltpu.PrefetchScalarGridSpec(
                num_scalar_prefetch=0,
                grid=(B,),
                in_specs=[pl.BlockSpec((1, C, HW_pad), lambda b: (b, 0, 0))]
                         + wspecs,
                out_specs=pl.BlockSpec((1, C, HW_pad), lambda b: (b, 0, 0)),
            ),
            compiler_params=pltpu.CompilerParams(
                dimension_semantics=("parallel",),
                vmem_limit_bytes=vmem_limit),
            cost_estimate=pl.CostEstimate(
                flops=2 * B * C * HW_pad + 4 * B * C * Cr,
                transcendentals=B * C,
                bytes_accessed=2 * B * C * HW_pad * itemsize),
        )(x, w1t, b1c, w2t, b2c)
    else:
        # ---- pass 1: spatial mean + fused SE MLP -> channel scales (B,C,1) ----
        # NOTE: on v7x (2 TCs) with B == 1 this pass has no parallel work to
        # split; the fused path above covers most such (small-image) cases.
        T1 = _pick_hw_tile(HW_pad, C, itemsize, _POOL_TILE_BYTES)
        t1_bytes = C * T1 * itemsize
        s = pl.pallas_call(
            functools.partial(_pool_se_kernel, inv_hw=inv_hw),
            out_shape=jax.ShapeDtypeStruct((B, C, 1), jnp.float32),
            grid_spec=pltpu.PrefetchScalarGridSpec(
                num_scalar_prefetch=0,
                grid=(B, HW_pad // T1),
                in_specs=[pl.BlockSpec((1, C, T1), lambda b, t: (b, 0, t))]
                         + wspecs,
                out_specs=pl.BlockSpec((1, C, 1), lambda b, t: (b, 0, 0)),
            ),
            compiler_params=pltpu.CompilerParams(
                dimension_semantics=("parallel", "arbitrary"),
                vmem_limit_bytes=max(2 * t1_bytes + C * T1 * 4 + 2 * _MIB,
                                     32 * _MIB)),
            cost_estimate=pl.CostEstimate(
                flops=B * C * HW_pad + 4 * B * C * Cr,
                transcendentals=B * C,
                bytes_accessed=B * C * HW_pad * itemsize + B * C * 4),
        )(x, w1t, b1c, w2t, b2c)

        # ---- pass 2: channel-wise rescale, streaming over HW tiles ----
        T2 = _pick_hw_tile(HW_pad, C, itemsize, _SCALE_TILE_BYTES)
        t2_bytes = C * T2 * itemsize
        out = pl.pallas_call(
            _scale_kernel,
            out_shape=jax.ShapeDtypeStruct((B, C, HW_pad), dtype),
            grid_spec=pltpu.PrefetchScalarGridSpec(
                num_scalar_prefetch=0,
                grid=(B, HW_pad // T2),
                in_specs=[pl.BlockSpec((1, C, T2), lambda b, t: (b, 0, t)),
                          pl.BlockSpec((1, C, 1), lambda b, t: (b, 0, 0))],
                out_specs=pl.BlockSpec((1, C, T2), lambda b, t: (b, 0, t)),
            ),
            compiler_params=pltpu.CompilerParams(
                dimension_semantics=("parallel", "parallel"),
                vmem_limit_bytes=max(4 * t2_bytes + C * T2 * 4 + 2 * _MIB,
                                     32 * _MIB)),
            cost_estimate=pl.CostEstimate(
                flops=B * C * HW_pad,
                transcendentals=0,
                bytes_accessed=2 * B * C * HW_pad * itemsize + B * C * 4),
        )(x, s)

    if HW_pad != HW:
        out = out[:, :, :HW]
    return out.reshape(B, C, H, W)


def _reference(x_nchw, w1, b1, w2, b2):
    # pure-JAX reference matching the PyTorch forward (full f32 matmuls)
    pooled = jnp.mean(x_nchw.astype(jnp.float32), axis=(2, 3))          # (B, C)
    h = jnp.maximum(
        jnp.dot(pooled, w1, precision=jax.lax.Precision.HIGHEST) + b1, 0.0)
    s = jax.nn.sigmoid(
        jnp.dot(h, w2, precision=jax.lax.Precision.HIGHEST) + b2)
    return (x_nchw.astype(jnp.float32) * s[:, :, None, None]).astype(x_nchw.dtype)


if __name__ == "__main__":
    num_features = 64
    reduction = 16
    B, C, H, W = 2, num_features, 16, 16
    Cr = num_features // reduction

    key = jax.random.PRNGKey(0)
    kx, k1, k2, k3, k4 = jax.random.split(key, 5)

    x = jax.random.normal(kx, (B, C, H, W), dtype=jnp.float32)

    # PyTorch Conv2d 1x1 weights are (out, in, 1, 1); stored here as the
    # equivalent (in, out) linear weights for the pooled-vector matmuls.
    w1 = jax.random.normal(k1, (C, Cr), dtype=jnp.float32) * 0.1
    b1 = jax.random.normal(k2, (Cr,), dtype=jnp.float32) * 0.1
    w2 = jax.random.normal(k3, (Cr, C), dtype=jnp.float32) * 0.1
    b2 = jax.random.normal(k4, (C,), dtype=jnp.float32) * 0.1

    ref = _reference(x, w1, b1, w2, b2)

    # 1) fully-fused single-pass path (per-batch slab fits VMEM).
    out_fused = jax.block_until_ready(ca_layer(x, w1, b1, w2, b2))
    assert out_fused.shape == (B, C, H, W)
    assert jnp.allclose(out_fused, ref, atol=1e-4, rtol=1e-4)

    # 2) force the two-pass streaming path on the same data.
    out_2pass = jax.block_until_ready(
        ca_layer(x, w1, b1, w2, b2, fused_slab_bytes=0))
    assert jnp.allclose(out_2pass, ref, atol=1e-4, rtol=1e-4)

    # 3) non-128-aligned HW exercises the zero-padding path.
    x_odd = jax.random.normal(kx, (B, C, 10, 10), dtype=jnp.float32)
    out_odd = jax.block_until_ready(ca_layer(x_odd, w1, b1, w2, b2))
    assert jnp.allclose(out_odd, _reference(x_odd, w1, b1, w2, b2),
                        atol=1e-4, rtol=1e-4)

    print("KERNEL_OK")
</pallas_src>

<mosaic_0001>
module attributes {stable_mosaic.version = 11 : i64} {
  func.func @_fused_kernel(%arg0: i32, %arg1: memref<1x64x256xf32, #tpu.memory_space<vmem>>, %arg2: memref<4x64xf32, #tpu.memory_space<vmem>>, %arg3: memref<4x1xf32, #tpu.memory_space<vmem>>, %arg4: memref<64x4xf32, #tpu.memory_space<vmem>>, %arg5: memref<64x1xf32, #tpu.memory_space<vmem>>, %arg6: memref<1x64x256xf32, #tpu.memory_space<vmem>>) attributes {dimension_semantics = [#tpu.dimension_semantics<parallel>], iteration_bounds = array<i64: 2>, scalar_prefetch = 0 : i64, scratch_operands = 0 : i64, tpu.core_type = #tpu.core_type<tc>, window_params = [{transform_indices = @transform_0, window_bounds = array<i64: 1, 64, 256>}, {pipeline_mode = #tpu.pipeline_mode<synchronous>, transform_indices = @transform_1, window_bounds = array<i64: 4, 64>}, {pipeline_mode = #tpu.pipeline_mode<synchronous>, transform_indices = @transform_2, window_bounds = array<i64: 4, 1>}, {pipeline_mode = #tpu.pipeline_mode<synchronous>, transform_indices = @transform_3, window_bounds = array<i64: 64, 4>}, {pipeline_mode = #tpu.pipeline_mode<synchronous>, transform_indices = @transform_4, window_bounds = array<i64: 64, 1>}, {transform_indices = @transform_5, window_bounds = array<i64: 1, 64, 256>}]} {
    %c0 = arith.constant 0 : index
    %c0_0 = arith.constant 0 : index
    %c0_1 = arith.constant 0 : index
    %0 = vector.load %arg1[%c0, %c0_0, %c0_1] : memref<1x64x256xf32, #tpu.memory_space<vmem>>, vector<1x64x256xf32>
    %1 = vector.shape_cast %0 : vector<1x64x256xf32> to vector<64x256xf32>
    %cst = arith.constant dense<0.000000e+00> : vector<64xf32>
    %2 = vector.multi_reduction <add>, %1, %cst [1] : vector<64x256xf32> to vector<64xf32>
    %3 = vector.shape_cast %2 : vector<64xf32> to vector<64x1xf32>
    %cst_2 = arith.constant 3.906250e-03 : f32
    %4 = vector.broadcast %cst_2 : f32 to vector<64x1xf32>
    %5 = arith.mulf %3, %4 : vector<64x1xf32>
    %c0_3 = arith.constant 0 : index
    %c0_4 = arith.constant 0 : index
    %6 = vector.load %arg2[%c0_3, %c0_4] : memref<4x64xf32, #tpu.memory_space<vmem>>, vector<4x64xf32>
    %cst_5 = arith.constant dense<0.000000e+00> : vector<4x1xf32>
    %7 = tpu.matmul %6, %5, %cst_5 {dimension_numbers = #tpu.dot_dimension_numbers<[1], [0], [0], [1], [0, 0, 1, 1], [], []>, precision = #tpu.contract_precision<fp32>} : vector<4x64xf32>, vector<64x1xf32>, vector<4x1xf32> -> vector<4x1xf32>
    %c0_6 = arith.constant 0 : index
    %c0_7 = arith.constant 0 : index
    %8 = vector.load %arg3[%c0_6, %c0_7] : memref<4x1xf32, #tpu.memory_space<vmem>>, vector<4x1xf32>
    %9 = arith.addf %7, %8 : vector<4x1xf32>
    %cst_8 = arith.constant 0.000000e+00 : f32
    %10 = vector.broadcast %cst_8 : f32 to vector<4x1xf32>
    %11 = arith.maximumf %9, %10 : vector<4x1xf32>
    %c0_9 = arith.constant 0 : index
    %c0_10 = arith.constant 0 : index
    %12 = vector.load %arg4[%c0_9, %c0_10] : memref<64x4xf32, #tpu.memory_space<vmem>>, vector<64x4xf32>
    %cst_11 = arith.constant dense<0.000000e+00> : vector<64x1xf32>
    %13 = tpu.matmul %12, %11, %cst_11 {dimension_numbers = #tpu.dot_dimension_numbers<[1], [0], [0], [1], [0, 0, 1, 1], [], []>, precision = #tpu.contract_precision<fp32>} : vector<64x4xf32>, vector<4x1xf32>, vector<64x1xf32> -> vector<64x1xf32>
    %c0_12 = arith.constant 0 : index
    %c0_13 = arith.constant 0 : index
    %14 = vector.load %arg5[%c0_12, %c0_13] : memref<64x1xf32, #tpu.memory_space<vmem>>, vector<64x1xf32>
    %15 = arith.addf %13, %14 : vector<64x1xf32>
    %16 = arith.negf %15 : vector<64x1xf32>
    %17 = math.exp %16 : vector<64x1xf32>
    %cst_14 = arith.constant 1.000000e+00 : f32
    %18 = vector.broadcast %cst_14 : f32 to vector<64x1xf32>
    %19 = arith.addf %18, %17 : vector<64x1xf32>
    %20 = arith.divf %18, %19 : vector<64x1xf32>
    %c0_15 = arith.constant 0 : index
    %c0_16 = arith.constant 0 : index
    %c0_17 = arith.constant 0 : index
    %21 = vector.load %arg1[%c0_15, %c0_16, %c0_17] : memref<1x64x256xf32, #tpu.memory_space<vmem>>, vector<1x64x256xf32>
    %22 = vector.shape_cast %21 : vector<1x64x256xf32> to vector<64x256xf32>
    %23 = vector.broadcast %20 : vector<64x1xf32> to vector<64x256xf32>
    %24 = arith.mulf %22, %23 : vector<64x256xf32>
    %c0_18 = arith.constant 0 : index
    %c0_19 = arith.constant 0 : index
    %c0_20 = arith.constant 0 : index
    %25 = vector.load %arg6[%c0_18, %c0_19, %c0_20] : memref<1x64x256xf32, #tpu.memory_space<vmem>>, vector<1x64x256xf32>
    %26 = vector.shape_cast %25 : vector<1x64x256xf32> to vector<64x256xf32>
    %27 = vector.shape_cast %24 : vector<64x256xf32> to vector<1x64x256xf32>
    tpu.vector_store %arg6[%c0_18, %c0_19, %c0_20], %27 {strides = array<i32>} : memref<1x64x256xf32, #tpu.memory_space<vmem>>, vector<1x64x256xf32>,
    return
  }
  func.func @transform_0(%arg0: i32) -> (i32, i32, i32) {
    %c0_i32 = arith.constant 0 : i32
    %c0_i32_0 = arith.constant 0 : i32
    %c0_i32_1 = arith.constant 0 : i32
    return %arg0, %c0_i32, %c0_i32_0 : i32, i32, i32
  }
  func.func @transform_1(%arg0: i32) -> (i32, i32) {
    %c0_i32 = arith.constant 0 : i32
    %c0_i32_0 = arith.constant 0 : i32
    %c0_i32_1 = arith.constant 0 : i32
    return %c0_i32, %c0_i32_0 : i32, i32
  }
  func.func @transform_2(%arg0: i32) -> (i32, i32) {
    %c0_i32 = arith.constant 0 : i32
    %c0_i32_0 = arith.constant 0 : i32
    %c0_i32_1 = arith.constant 0 : i32
    return %c0_i32, %c0_i32_0 : i32, i32
  }
  func.func @transform_3(%arg0: i32) -> (i32, i32) {
    %c0_i32 = arith.constant 0 : i32
    %c0_i32_0 = arith.constant 0 : i32
    %c0_i32_1 = arith.constant 0 : i32
    return %c0_i32, %c0_i32_0 : i32, i32
  }
  func.func @transform_4(%arg0: i32) -> (i32, i32) {
    %c0_i32 = arith.constant 0 : i32
    %c0_i32_0 = arith.constant 0 : i32
    %c0_i32_1 = arith.constant 0 : i32
    return %c0_i32, %c0_i32_0 : i32, i32
  }
  func.func @transform_5(%arg0: i32) -> (i32, i32, i32) {
    %c0_i32 = arith.constant 0 : i32
    %c0_i32_0 = arith.constant 0 : i32
    %c0_i32_1 = arith.constant 0 : i32
    return %arg0, %c0_i32, %c0_i32_0 : i32, i32, i32
  }
}

</mosaic_0001>

<bundles_post_ra>
// kernel: tpu_custom_call.1
= control target key start
LH: loop header
LB: loop body
LE: loop exit
PB: predicated region body
PF: predicated region fallthrough
CT: control target
= control target key end

     0   :  { %10 = vsyncpa [#allocation3], 0  ;;  %s1962_s0 = inlined_call_operand.hbm [shape: f32[2,64,256], index: 0, kind: input, shape index: {}]   ;;  %s1963_s1 = inlined_call_operand.vmem [shape: f32[4,64], index: 1, kind: input, shape index: {}]   ;;  %s1964_s2 = inlined_call_operand.vmem [shape: f32[4,1], index: 2, kind: input, shape index: {}]   ;;  %s1965_s3 = inlined_call_operand.vmem [shape: f32[64,4], index: 3, kind: input, shape index: {}]   ;;  %s1966_s4 = inlined_call_operand.vmem [shape: f32[64,1], index: 4, kind: input, shape index: {}]   ;;  %s1967_s5 = inlined_call_operand.hbm [shape: f32[2,64,256], index: 5, kind: output, shape index: {}]  }
   0x1   :  { %12 = vsyncpa [#allocation3 + $0x1], 0 }
   0x2   :  { %13 = vsyncpa [#allocation4], 0 }
   0x3   :  { %15 = vsyncpa [#allocation4 + $0x1], 0  ;;  %s1519_s18 = smov 0   ;;  %s1521_s19 = smov 0  }
   0x4   :  { %s1523_s20 = smov 0   ;;  %s1525_s21 = smov 0  }
   0x5 LB: > { %s1540_s22 = sadd.s32 4294967295, %s1482_s21   ;;  %s1258_s23 = sadd.s32 4294967294, %s1482_s21   ;;  %s1482_s21 = sphi %s1525_s21, %s1977_s21   ;;  %s1478_s20 = sphi %s1523_s20, %s1976_s20   ;;  %s1474_s19 = sphi %s1521_s19, %s1975_s19   ;;  %s1470_s18 = sphi %s1519_s18, %s1974_s18  }
   0x6   : > { %s1544_s24 = sadd.s32 1, %s1482_s21   ;;  %s28_s25 = sadd.s32 1, %s1478_s20 }
   0x7   : > { %s25_s26 = ssub.s32 %s1482_s21, %s1544_s24  ;;  %p35_p0 = scmp.ne.s32.totalorder %s1478_s20, %s1474_s19 }
   0x8   : > { %p26_p1 = scmp.eq.s32.totalorder %s25_s26, 0  ;;  %p36_p2 = scmp.eq.s32.totalorder %s1482_s21, 0 }
   0x9   : > { %p41_p3 = scmp.ne.s32.totalorder %s1474_s19, %s1470_s18  ;;  %p42_p4 = scmp.eq.s32.totalorder %s1540_s22, 0 }
   0xa   : > { %s1556_s27 = scalar_select %p26_p1, %s1478_s20, %s28_s25  }
   0xb   : > { %p1558_p5 = por %p36_p2, %p35_p0  ;;  %p1562_p6 = por %p42_p4, %p41_p3 }
   0xc   : > { %p149_p7 = scmp.eq.s32.totalorder %s1540_s22, 1  ;;  %p155_p8 = scmp.eq.s32.totalorder %s1258_s23, 1 }
   0xd   : > { %p1296_p10 = scmp.lt.s32.totalorder %s1482_s21, 2  ;;  %s187_s7 = sand.u32 1, %s1478_s20  }
   0xe   : > { %p1569_p11 = por %p149_p7, %p35_p0  ;;  %p1573_p12 = por %p155_p8, %p41_p3 }
   0xf   : > { %s1280_s8 = sshll.u32 %s1482_s21, 7  ;;  %s1261_s9 = sshll.u32 %s187_s7, 7 }
  0x10   : > { %s196_s12 = scalar_lea.hbm %s1962_s0, %s1280_s8  ;;  %s191_s14 = scalar_lea.vmem [#allocation2], %s1261_s9 }
  0x11   : > { %s197_s13 = sshll.u32 %s196_s12, 4  ;;  %s199_s15 = sshll.u32 %s191_s14, 4  ;;  %s198_s13 = int_to_ptr.hbm [resolvable:$true] %s197_s13  ;;  %s200_s15 = int_to_ptr.vmem [resolvable:$true] %s199_s15 }
  0x12   : > { %p1584_p13 = pnand %p1296_p10, %p1558_p5  ;;  %p1264_p0 = scmp.ge.s32.totalorder %s1482_s21, 1 }
  0x13   : > { %p207_p1 = scmp.lt.s32.totalorder %s1482_s21, 3  ;;  %s188_s17 = scalar_lea.sflag [#allocation3], %s187_s7 }
  0x14   : > { %s1386_s23 = sshra.s32 %s198_s13, 4  ;;  %p1390_p3 = pneg %p1584_p13  ;;  %s1387_s23 = int_to_ptr.hbm [resolvable:$true] %s1386_s23 }
  0x15   : > { %s1388_s25 = scalar_lea.hbm %s1387_s23, 128  ;;  %s1393_s28 = scalar_lea.hbm %s1962_s0, 256 }
  0x16   : > { %p1389_p2 = scmp.ne.s32.totalorder %s1387_s23, %s1388_s25  ;;  %p1394_p5 = scmp.lt.s32.totalorder %s1387_s23, %s1962_s0 }
  0x17   : > { %p1395_p8 = scmp.lt.s32.totalorder %s1393_s28, %s1388_s25 }
  0x18   : > { %p1391_p4 = pnand %p1390_p3, %p1389_p2 }
  0x19   : > { %p1396_p10 = por %p1395_p8, %p1394_p5 }
  0x1a   : > { %p1392_p7 = pneg %p1391_p4 }
  0x1c   : > { %p1397_p9 = pnand %p1396_p10, %p1392_p7 }
  0x1e   : > { %1400 = shalt.err (!%p1397_p9)
}
  0x1f   : > { %s1484_s7 = smov 256   ;;  %s1485_s11 = smov 16  }
  0x20   : > { %1291 = dma.hbm_to_vmem [thread:$0]  (!%p1584_p13), %s198_s13, 2048, %s200_s15, %s188_s17, %s1484_s7, %s1484_s7, %s1485_s11  }
  0x21   : > { %p208_p2 = pnand %p1264_p0, %p207_p1 }
  0x22   : > { %s1605_s12 = sand.u32 (!%p208_p2), 1, %s1474_s19  }
  0x23   : > { %211 = sbr.rel (%p208_p2) target bundleno = 732 (0x2dc), region = 40  ;;  %s1265_s14 = sshll.u32 (!%p208_p2), %s1605_s12, 7 }
  0x24   : > { %s214_s23 = scalar_lea.sflag (!%p208_p2), [#allocation3], %s1605_s12  ;;  %s1611_s25 = scalar_lea.vmem (!%p208_p2), [#allocation2], %s1265_s14 }
  0x28   : > { %1461 = dma.done.wait (%p1562_p6), %s214_s23, 2048  }
  0x29   : > { %1463 = vsyncadd (%p1562_p6), %s214_s23, 4294965248  ;;  %v259_v0 = vld [vmem:[%s1611_s25 + $0x70] sm:$0xff]  ;;  %v260_v1 = vld [vmem:[%s1611_s25 + $0x78] sm:$0xff]  ;;  %vm295_vm0 = vcmask 523264   ;;  %vm553_vm1 = vcmask 31744   ;;  %vm578_vm2 = vcmask 1043456  }
  0x2a   : > { %v255_v2 = vld [vmem:[%s1611_s25 + $0x50] sm:$0xff]  ;;  %v282_v3 = vadd.f32 %v260_v1, %v259_v0  ;;  %v256_v4 = vld [vmem:[%s1611_s25 + $0x58] sm:$0xff]  ;;  %v257_v9 = vld [vmem:[%s1611_s25 + $0x60] sm:$0xff]  ;;  %s1896_s7 = scalar_lea.vmem [#allocation5], %s1265_s14  ;;  %s1281_s14 = sshll.u32 %s1540_s22, 7 }
  0x2b   : > { %v251_v5 = vld [vmem:[%s1611_s25 + $0x30] sm:$0xff]  ;;  %v252_v6 = vld [vmem:[%s1611_s25 + $0x38] sm:$0xff]  ;;  %v276_v7 = vadd.f32 %v256_v4, %v255_v2  ;;  %v258_v10 = vld [vmem:[%s1611_s25 + $0x68] sm:$0xff]  ;;  %s1181_s29 = scalar_lea.hbm %s1967_s5, %s1281_s14  ;;  %s1182_s13 = sshll.u32 %s1896_s7, 4  ;;  %s1183_s13 = int_to_ptr.vmem [resolvable:$true] %s1182_s13 }
  0x2c   : > { %v270_v8 = vadd.f32 %v252_v6, %v251_v5  ;;  %283 = vadd.xlane.f32.xlu0 %v282_v3  ;;  %v253_v11 = vld [vmem:[%s1611_s25 + $0x40] sm:$0xff]  ;;  %v254_v12 = vld [vmem:[%s1611_s25 + $0x48] sm:$0xff]  ;;  %v279_v15 = vadd.f32 %v258_v10, %v257_v9  ;;  %v247_v18 = vld [vmem:[%s1611_s25 + $0x10] sm:$0xff]  ;;  %s1184_s15 = sshll.u32 %s1181_s29, 4  ;;  %s1170_s16 = scalar_lea.sflag [#allocation4], %s1605_s12  ;;  %s1185_s15 = int_to_ptr.hbm [resolvable:$true] %s1184_s15 }
  0x2d   : > { %277 = vadd.xlane.f32.xlu1 %v276_v7  ;;  %v249_v13 = vld [vmem:[%s1611_s25 + $0x20] sm:$0xff]  ;;  %v250_v14 = vld [vmem:[%s1611_s25 + $0x28] sm:$0xff]  ;;  %v273_v16 = vadd.f32 %v254_v12, %v253_v11  ;;  %v248_v19 = vld [vmem:[%s1611_s25 + $0x18] sm:$0xff]  ;;  %s1430_s17 = sshra.s32 %s1185_s15, 4  ;;  %s1436_s28 = scalar_lea.hbm %s1967_s5, 256  ;;  %s1431_s17 = int_to_ptr.hbm [resolvable:$true] %s1430_s17 }
  0x2e   : > { %271 = vadd.xlane.f32.xlu2 %v270_v8  ;;  %v267_v17 = vadd.f32 %v250_v14, %v249_v13  ;;  %v245_v20 = vld [vmem:[%s1611_s25] sm:$0xff]  ;;  %v246_v21 = vld [vmem:[%s1611_s25 + $0x8] sm:$0xff]  ;;  %v264_v22 = vadd.f32 %v248_v19, %v247_v18  ;;  %s1432_s22 = scalar_lea.hbm %s1431_s17, 128  ;;  %p1437_p0 = scmp.lt.s32.totalorder %s1431_s17, %s1967_s5 }
  0x2f   : > { %v261_v23 = vadd.f32 %v246_v21, %v245_v20  ;;  %v293_v29 = vld [vmem:[%s1963_s1] sm:$0xf]  ;;  %p1433_p6 = scmp.ne.s32.totalorder %s1431_s17, %s1432_s22  ;;  %p1438_p1 = scmp.lt.s32.totalorder %s1436_s28, %s1432_s22 }
  0x30   : > { %v297_v34 = vsel %vm295_vm0, %v293_v29, 0 }
  0x31   : > { %v1647_v37 = vand.u32 4294901760, %v297_v34  ;;  %p1434_p9 = pnand %p1433_p6, %p1569_p11  ;;  %p1439_p3 = por %p1438_p1, %p1437_p0 }
  0x33   : > { %v1664_v50 = vsub.f32 %v297_v34, %v1647_v37  ;;  %p1435_p13 = pneg %p1434_p9 }
  0x34   : > { %280 = vadd.xlane.f32.xlu0 %v279_v15 }
  0x35   : > { %274 = vadd.xlane.f32.xlu1 %v273_v16  ;;  %v325_v59 = vand.u32 4294901760, %v1664_v50  ;;  %p1440_p4 = pnand %p1439_p3, %p1435_p13 }
  0x36   : > { %268 = vadd.xlane.f32.xlu2 %v267_v17 }
  0x37   : > { %v326_v7 = vsub.f32 %v1664_v50, %v325_v59 }
  0x39   : > { %v327_v16 = vand.u32 4294901760, %v326_v7 }
  0x3c   : > { %265 = vadd.xlane.f32.xlu0 %v264_v22 }
  0x3d   : > { %262 = vadd.xlane.f32.xlu1 %v261_v23  ;;  %v294_v23 = vld [vmem:[%s1964_s2] sm:$0xf] }
  0x9f   : > { %v284_v24 = vpop.xlane.xlu0 %283 }
  0xa0   : > { %v292_v25 = vmul.f32 0.00390625, %v284_v24  ;;  %v278_v26 = vpop.xlane.xlu1 %277 }
  0xa1   : > { %v272_v27 = vpop.xlane.xlu2 %271  ;;  %v290_v28 = vmul.f32 0.00390625, %v278_v26  ;;  %v540_v26 = vld [vmem:[%s1965_s3 + $0x18] sm:$0xff] }
  0xa2   : > { %v1636_v30 = vand.u32 4294901760, %v292_v25  ;;  %v288_v33 = vmul.f32 0.00390625, %v272_v27  ;;  %v564_v29 = vsel %vm553_vm1, %v540_v26, 0 }
  0xa3   : > { %v1641_v32 = vand.u32 4294901760, %v290_v28  ;;  %v1725_v34 = vand.u32 4294901760, %v564_v29 }
  0xa4   : > { %v1639_v31 = vsub.f32 %v292_v25, %v1636_v30  ;;  %308 = vmatpush.msra.mxu0 %v1636_v30  ;;  %440 = vmatpush.msra.mxu3 %v1636_v30  ;;  %v1652_v39 = vand.u32 4294901760, %v288_v33  ;;  %v537_v25 = vld [vmem:[%s1965_s3] sm:$0xff] }
  0xa5   : > { %v1650_v38 = vsub.f32 %v290_v28, %v1641_v32  ;;  %v555_v28 = vsel %vm553_vm1, %v537_v25, 0 }
  0xa6   : > { %403 = vmatpush.msra.mxu2 %v1639_v31  ;;  %v342_v35 = vand.u32 4294901760, %v1639_v31  ;;  %v1667_v51 = vsub.f32 %v288_v33, %v1652_v39  ;;  %v1723_v33 = vand.u32 4294901760, %v555_v28 }
  0xa7   : > { %v281_v36 = vpop.xlane.xlu0 %280  ;;  %v354_v53 = vand.u32 4294901760, %v1650_v38 }
  0xa8   : > { %v291_v40 = vmul.f32 0.00390625, %v281_v36  ;;  %v275_v41 = vpop.xlane.xlu1 %274  ;;  %v343_v43 = vsub.f32 %v1639_v31, %v342_v35  ;;  %v366_v0 = vand.u32 4294901760, %v1667_v51 }
  0xa9   : > { %v269_v42 = vpop.xlane.xlu2 %268  ;;  %v289_v44 = vmul.f32 0.00390625, %v275_v41  ;;  %v355_v63 = vsub.f32 %v1650_v38, %v354_v53 }
  0xaa   : > { %v287_v45 = vmul.f32 0.00390625, %v269_v42  ;;  %v1657_v46 = vand.u32 4294901760, %v291_v40  ;;  %v344_v47 = vand.u32 4294901760, %v343_v43  ;;  %v367_v10 = vsub.f32 %v1667_v51, %v366_v0 }
  0xab   : > { %v1659_v48 = vand.u32 4294901760, %v289_v44  ;;  %v356_v9 = vand.u32 4294901760, %v355_v63 }
  0xac   : > { %v1661_v49 = vand.u32 4294901760, %v287_v45  ;;  %v347_v52 = vsub.f32 %v291_v40, %v1657_v46  ;;  %310 = vmatpush.msra.mxu0 %v1657_v46  ;;  %345 = vmatpush.msra.mxu1 %v344_v47  ;;  %v368_v17 = vand.u32 4294901760, %v367_v10  ;;  %v1737_v40 = vsub.f32 %v564_v29, %v1725_v34 }
  0xad   : > { %v1673_v54 = vsub.f32 %v289_v44, %v1659_v48  ;;  %442 = vmatpush.msra.mxu3 %v1657_v46 }
  0xae   : > { %v1677_v55 = vsub.f32 %v287_v45, %v1661_v49  ;;  %312 = vmatpush.msra.mxu0 %v1641_v32  ;;  %406 = vmatpush.msra.mxu2 %v347_v52  ;;  %v348_v56 = vand.u32 4294901760, %v347_v52 }
  0xaf   : > { %444 = vmatpush.msra.mxu3 %v1641_v32  ;;  %v266_v57 = vpop.xlane.xlu0 %265  ;;  %v360_v58 = vand.u32 4294901760, %v1673_v54 }
  0xb0   : > { %v286_v60 = vmul.f32 0.00390625, %v266_v57  ;;  %v263_v61 = vpop.xlane.xlu1 %262  ;;  %314 = vmatpush.msra.mxu0 %v1659_v48  ;;  %409 = vmatpush.msra.mxu2 %v1650_v38  ;;  %v349_v62 = vsub.f32 %v347_v52, %v348_v56  ;;  %v372_v5 = vand.u32 4294901760, %v1677_v55  ;;  %v541_v38 = vld [vmem:[%s1965_s3 + $0x20] sm:$0xff] }
  0xb1   : > { %v285_v1 = vmul.f32 0.00390625, %v263_v61  ;;  %446 = vmatpush.msra.mxu3 %v1659_v48  ;;  %v361_v4 = vsub.f32 %v1673_v54, %v360_v58  ;;  %v567_v44 = vsel %vm553_vm1, %v541_v38, 0 }
  0xb2   : > { %v319_v2 = vand.u32 4294901760, %v286_v60  ;;  %316 = vmatpush.msra.mxu0 %v1652_v39  ;;  %412 = vmatpush.msra.mxu2 %v1673_v54  ;;  %v350_v3 = vand.u32 4294901760, %v349_v62  ;;  %v373_v13 = vsub.f32 %v1677_v55, %v372_v5 }
  0xb3   : > { %v321_v6 = vand.u32 4294901760, %v285_v1  ;;  %448 = vmatpush.msra.mxu3 %v1652_v39  ;;  %v362_v12 = vand.u32 4294901760, %v361_v4 }
  0xb4   : > { %v377_v8 = vsub.f32 %v286_v60, %v319_v2  ;;  %318 = vmatpush.msra.mxu0 %v1661_v49  ;;  %351 = vmatpush.msra.mxu1 %v350_v3  ;;  %v374_v19 = vand.u32 4294901760, %v373_v13 }
  0xb5   : > { %v383_v11 = vsub.f32 %v285_v1, %v321_v6  ;;  %415 = vmatpush.msra.mxu2 %v1667_v51  ;;  %450 = vmatpush.msra.mxu3 %v1661_v49  ;;  %v542_v51 = vld [vmem:[%s1965_s3 + $0x28] sm:$0xff] }
  0xb6   : > { %320 = vmatpush.msra.mxu0 %v319_v2  ;;  %357 = vmatpush.msra.mxu1 %v356_v9  ;;  %v378_v14 = vand.u32 4294901760, %v377_v8 }
  0xb7   : > { %418 = vmatpush.msra.mxu2 %v1677_v55  ;;  %452 = vmatpush.msra.mxu3 %v319_v2  ;;  %v384_v15 = vand.u32 4294901760, %v383_v11 }
  0xb8   : > { %322 = vmatpush.msra.mxu0 %v321_v6  ;;  %363 = vmatpush.msra.mxu1 %v362_v12  ;;  %v379_v18 = vsub.f32 %v377_v8, %v378_v14 }
  0xb9   : > { %421 = vmatpush.msra.mxu2 %v377_v8  ;;  %454 = vmatpush.msra.mxu3 %v321_v6  ;;  %v385_v20 = vsub.f32 %v383_v11, %v384_v15 }
  0xba   : > { %473 = vmatpush.msrb.mxu0 %v342_v35  ;;  %369 = vmatpush.msra.mxu1 %v368_v17  ;;  %v380_v21 = vand.u32 4294901760, %v379_v18 }
  0xbb   : > { %424 = vmatpush.msra.mxu2 %v383_v11  ;;  %328 = vmatmul.f32.vlgmr.msra.gmra.mxu0 %v327_v16  ;;  %v386_v22 = vand.u32 4294901760, %v385_v20  ;;  %v544_v20 = vld [vmem:[%s1965_s3 + $0x38] sm:$0xff] }
  0xbc   : > { %477 = vmatpush.msrb.mxu0 %v348_v56  ;;  %375 = vmatpush.msra.mxu1 %v374_v19 }
  0xbd   : > { %427 = vmatmul.f32.vlgmr.msra.gmra.mxu2 %v1664_v50  ;;  %458 = vmatmul.f32.vlgmr.msra.gmra.mxu3 %v325_v59  ;;  %v539_v50 = vld [vmem:[%s1965_s3 + $0x10] sm:$0xff]  ;;  %v570_v59 = vsel %vm553_vm1, %v542_v51, 0  ;;  %v545_v51 = vld [vmem:[%s1966_s4] sm:$0xff] }
  0xbe   : > { %481 = vmatpush.msrb.mxu0 %v354_v53  ;;  %381 = vmatpush.msra.mxu1 %v380_v21  ;;  %v1771_v3 = vand.u32 4294901760, %v570_v59 }
  0xc0   : > { %485 = vmatpush.msrb.mxu0 %v360_v58  ;;  %387 = vmatpush.msra.mxu1 %v386_v22  ;;  %v561_v58 = vsel %vm553_vm1, %v539_v50, 0  ;;  %v1784_v10 = vsub.f32 %v570_v59, %v1771_v3 }
  0xc1   : > { %389 = vmatmul.f32.vlgmr.msra.gmra.mxu1 %v1647_v37 }
  0xc2   : > { %516 = vmatpush.msrb.mxu1 %v1636_v30  ;;  %489 = vmatpush.msrb.mxu0 %v366_v0  ;;  %v641_v17 = vand.u32 4294901760, %v1784_v10 }
  0xc4   : > { %518 = vmatpush.msrb.mxu1 %v1657_v46  ;;  %493 = vmatpush.msrb.mxu0 %v372_v5  ;;  %v625_v46 = vand.u32 4294901760, %v1737_v40  ;;  %v543_v5 = vld [vmem:[%s1965_s3 + $0x30] sm:$0xff]  ;;  %v642_v22 = vsub.f32 %v1784_v10, %v641_v17 }
  0xc5   : > { %v573_v12 = vsel %vm553_vm1, %v543_v5, 0  ;;  %v547_v5 = vld [vmem:[%s1966_s4 + $0x10] sm:$0xff] }
  0xc6   : > { %520 = vmatpush.msrb.mxu1 %v1641_v32  ;;  %497 = vmatpush.msrb.mxu0 %v378_v14  ;;  %v626_v54 = vsub.f32 %v1737_v40, %v625_v46  ;;  %v1788_v18 = vand.u32 4294901760, %v573_v12  ;;  %v643_v26 = vand.u32 4294901760, %v642_v22 }
  0xc8   : > { %522 = vmatpush.msrb.mxu1 %v1659_v48  ;;  %501 = vmatpush.msrb.mxu0 %v384_v15  ;;  %v627_v62 = vand.u32 4294901760, %v626_v54 }
  0xc9   : > { %503 = vmatmul.f32.vlgmr.msrb.gmra.mxu0 %v1647_v37 }
  0xca   : > { %524 = vmatpush.msrb.mxu1 %v1652_v39  ;;  %v1734_v39 = vsub.f32 %v555_v28, %v1723_v33 }
  0xcc   : > { %526 = vmatpush.msrb.mxu1 %v1661_v49  ;;  %v601_v45 = vand.u32 4294901760, %v1734_v39  ;;  %v1745_v49 = vand.u32 4294901760, %v567_v44 }
  0xce   : > { %528 = vmatpush.msrb.mxu1 %v319_v2  ;;  %v602_v53 = vsub.f32 %v1734_v39, %v601_v45  ;;  %v1763_v57 = vsub.f32 %v567_v44, %v1745_v49  ;;  %v1769_v2 = vand.u32 4294901760, %v561_v58 }
  0xd0   : > { %530 = vmatpush.msrb.mxu1 %v321_v6  ;;  %v603_v61 = vand.u32 4294901760, %v602_v53  ;;  %v633_v1 = vand.u32 4294901760, %v1763_v57  ;;  %v616_v9 = vsub.f32 %v561_v58, %v1769_v2  ;;  %v546_v58 = vld [vmem:[%s1966_s4 + $0x8] sm:$0xff] }
  0xd1   : > { %532 = vmatmul.f32.vlgmr.msrb.gmra.mxu1 %v1647_v37  ;;  %v538_v37 = vld [vmem:[%s1965_s3 + $0x8] sm:$0xff] }
  0xd2   : > { %v558_v42 = vsel %vm553_vm1, %v538_v37, 0  ;;  %v634_v8 = vsub.f32 %v1763_v57, %v633_v1  ;;  %v617_v16 = vand.u32 4294901760, %v616_v9 }
  0xd3   : > { %v1743_v47 = vand.u32 4294901760, %v558_v42 }
  0xd4   : > { %v635_v15 = vand.u32 4294901760, %v634_v8  ;;  %v618_v21 = vsub.f32 %v616_v9, %v617_v16 }
  0xd5   : > { %v1760_v55 = vsub.f32 %v558_v42, %v1743_v47 }
  0xd6   : > { %v619_v25 = vand.u32 4294901760, %v618_v21 }
  0xd7   : > { %v609_v63 = vand.u32 4294901760, %v1760_v55 }
  0xd9   : > { %v610_v7 = vsub.f32 %v1760_v55, %v609_v63 }
  0xdb   : > { %v611_v14 = vand.u32 4294901760, %v610_v7 }
 0x138   : > { %v329_v24 = vpop.f32.mrf.mxu0 }
 0x139   : > { %v330_v27 = vadd.f32 %v329_v24, %v294_v23  ;;  %v648_v23 = vsub.f32 %v573_v12, %v1788_v18  ;;  %v576_v24 = vsel %vm553_vm1, %v544_v20, 0 }
 0x13a   : > { %v655_v28 = vand.u32 4294901760, %v576_v24 }
 0x13e   : > { %v390_v30 = vpop.f32.mrf.mxu1 }
 0x13f   : > { %v391_v31 = vadd.f32 %v390_v30, %v330_v27  ;;  %v649_v27 = vand.u32 4294901760, %v648_v23  ;;  %v656_v30 = vsub.f32 %v576_v24, %v655_v28 }
 0x140   : > { %v428_v32 = vpop.f32.mrf.mxu2  ;;  %v459_v36 = vpop.f32.mrf.mxu3 }
 0x141   : > { %v429_v35 = vadd.f32 %v428_v32, %v391_v31  ;;  %v650_v29 = vsub.f32 %v648_v23, %v649_v27  ;;  %v657_v32 = vand.u32 4294901760, %v656_v30 }
 0x143   : > { %v460_v41 = vadd.f32 %v459_v36, %v429_v35  ;;  %v651_v31 = vand.u32 4294901760, %v650_v29  ;;  %v658_v35 = vsub.f32 %v656_v30, %v657_v32  ;;  %v549_v29 = vld [vmem:[%s1966_s4 + $0x20] sm:$0xff] }
 0x145   : > { %v659_v36 = vand.u32 4294901760, %v658_v35 }
 0x146   : > { %v504_v43 = vpop.f32.mrf.mxu0 }
 0x147   : > { %v505_v48 = vadd.f32 %v504_v43, %v460_v41 }
 0x14e   : > { %v533_v52 = vpop.f32.mrf.mxu1 }
 0x14f   : > { %v534_v56 = vadd.f32 %v533_v52, %v505_v48 }
 0x151   : > { %v536_v60 = vmax.f32 %v534_v56, 0.0 }
 0x153   : > { %v580_v0 = vsel %vm578_vm2, %v536_v60, 0 }
 0x154   : > { %v597_v4 = vand.u32 4294901760, %v580_v0 }
 0x156   : > { %v680_v6 = vsub.f32 %v580_v0, %v597_v4  ;;  %598 = vmatpush.msra.mxu0 %v597_v4  ;;  %1282 = vmatpush.msrb.mxu2 %v597_v4 }
 0x157   : > { %604 = vmatmul.f32.vlgmr.msra.gmra.mxu0 %v603_v61  ;;  %628 = vmatmul.f32.vlgmr.msrb.gmra.mxu2 %v627_v62 }
 0x158   : > { %735 = vmatpush.msrb.mxu0 %v680_v6  ;;  %v681_v11 = vand.u32 4294901760, %v680_v6 }
 0x15a   : > { %861 = vmatpush.msra.mxu2 %v681_v11  ;;  %v682_v13 = vsub.f32 %v680_v6, %v681_v11 }
 0x15c   : > { %v683_v19 = vand.u32 4294901760, %v682_v13 }
 0x15e   : > { %684 = vmatpush.msra.mxu1 %v683_v19  ;;  %1283 = vmatpush.msrb.mxu3 %v683_v19  ;;  %v548_v19 = vld [vmem:[%s1966_s4 + $0x18] sm:$0xff] }
 0x15f   : > { %612 = vmatmul.f32.gmra.mxu0 %v611_v14  ;;  %636 = vmatmul.f32.gmra.mxu2 %v635_v15 }
 0x160   : > { %686 = vmatmul.f32.vlgmr.msra.gmra.mxu1 %v1723_v33  ;;  %698 = vmatmul.f32.vlgmr.msrb.gmra.mxu3 %v1725_v34 }
 0x161   : > { %793 = vmatpush.msrb.mxu1 %v597_v4  ;;  %911 = vmatpush.msra.mxu3 %v597_v4  ;;  %v1486_v4 = vmov 0  }
 0x162   : > { %1335 = vset.pattern.permute.xlu2 %v1486_v4  ;;  %1336 = vset.pattern.permute.xlu0 %v1486_v4 }
 0x163   : > { %1337 = vset.pattern.permute.xlu1 %v1486_v4 }
 0x167   : > { %620 = vmatmul.f32.gmra.mxu0 %v619_v25  ;;  %644 = vmatmul.f32.gmra.mxu2 %v643_v26 }
 0x168   : > { %690 = vmatmul.f32.gmra.mxu1 %v1743_v47  ;;  %702 = vmatmul.f32.gmra.mxu3 %v1745_v49 }
 0x16f   : > { %652 = vmatmul.f32.gmra.mxu2 %v651_v31  ;;  %738 = vmatmul.f32.vlgmr.msrb.gmra.mxu0 %v1734_v39 }
 0x170   : > { %694 = vmatmul.f32.gmra.mxu1 %v1769_v2  ;;  %706 = vmatmul.f32.gmra.mxu3 %v1771_v3 }
 0x177   : > { %660 = vmatmul.f32.gmra.mxu2 %v659_v36  ;;  %743 = vmatmul.f32.gmra.mxu0 %v1760_v55 }
 0x178   : > { %710 = vmatmul.f32.gmra.mxu3 %v1788_v18  ;;  %797 = vmatmul.f32.vlgmr.msrb.gmra.mxu1 %v601_v45 }
 0x17f   : > { %748 = vmatmul.f32.gmra.mxu0 %v616_v9  ;;  %863 = vmatmul.f32.vlgmr.msra.gmra.mxu2 %v1723_v33 }
 0x180   : > { %714 = vmatmul.f32.gmra.mxu3 %v655_v28  ;;  %803 = vmatmul.f32.gmra.mxu1 %v609_v63 }
 0x187   : > { %753 = vmatmul.f32.gmra.mxu0 %v1737_v40  ;;  %867 = vmatmul.f32.gmra.mxu2 %v1743_v47 }
 0x188   : > { %809 = vmatmul.f32.gmra.mxu1 %v617_v16  ;;  %913 = vmatmul.f32.vlgmr.msra.gmra.mxu3 %v1723_v33 }
 0x18f   : > { %758 = vmatmul.f32.gmra.mxu0 %v1763_v57  ;;  %871 = vmatmul.f32.gmra.mxu2 %v1769_v2 }
 0x190   : > { %815 = vmatmul.f32.gmra.mxu1 %v625_v46  ;;  %917 = vmatmul.f32.gmra.mxu3 %v1743_v47 }
 0x197   : > { %763 = vmatmul.f32.gmra.mxu0 %v1784_v10  ;;  %875 = vmatmul.f32.gmra.mxu2 %v1725_v34 }
 0x198   : > { %821 = vmatmul.f32.gmra.mxu1 %v633_v1  ;;  %921 = vmatmul.f32.gmra.mxu3 %v1769_v2 }
 0x19f   : > { %768 = vmatmul.f32.gmra.mxu0 %v648_v23  ;;  %879 = vmatmul.f32.gmra.mxu2 %v1745_v49 }
 0x1a0   : > { %827 = vmatmul.f32.gmra.mxu1 %v641_v17  ;;  %925 = vmatmul.f32.gmra.mxu3 %v1725_v34 }
 0x1a7   : > { %773 = vmatmul.f32.gmra.mxu0 %v656_v30  ;;  %883 = vmatmul.f32.gmra.mxu2 %v1771_v3 }
 0x1a8   : > { %833 = vmatmul.f32.gmra.mxu1 %v649_v27  ;;  %929 = vmatmul.f32.gmra.mxu3 %v1745_v49 }
 0x1af   : > { %887 = vmatmul.f32.gmra.mxu2 %v1788_v18 }
 0x1b0   : > { %839 = vmatmul.f32.gmra.mxu1 %v657_v32  ;;  %933 = vmatmul.f32.gmra.mxu3 %v1771_v3 }
 0x1b7   : > { %891 = vmatmul.f32.gmra.mxu2 %v655_v28 }
 0x1b8   : > { %937 = vmatmul.f32.gmra.mxu3 %v1788_v18 }
 0x1c0   : > { %941 = vmatmul.f32.gmra.mxu3 %v655_v28 }
 0x1d4   : > { %v605_v33 = vpop.f32.mrf.mxu0 }
 0x1d5   : > { %v606_v53 = vadd.f32 %v605_v33, %v545_v51 }
 0x1da   : > { %v629_v37 = vpop.f32.mrf.mxu2 }
 0x1db   : > { %v630_v24 = vadd.f32 %v629_v37, %v548_v19 }
 0x1dc   : > { %v613_v39 = vpop.f32.mrf.mxu0 }
 0x1dd   : > { %v687_v38 = vpop.f32.mrf.mxu1  ;;  %v614_v60 = vadd.f32 %v613_v39, %v546_v58 }
 0x1de   : > { %v688_v56 = vadd.f32 %v687_v38, %v606_v53 }
 0x1e2   : > { %v1830_v34 = vpop.f32.mrf.mxu2 }
 0x1e3   : > { %v699_v40 = vpop.f32.mrf.mxu3  ;;  %v638_v37 = vadd.f32 %v1830_v34, %v549_v29 }
 0x1e4   : > { %v621_v42 = vpop.f32.mrf.mxu0  ;;  %v700_v30 = vadd.f32 %v699_v40, %v630_v24 }
 0x1e5   : > { %v691_v41 = vpop.f32.mrf.mxu1  ;;  %v622_v8 = vadd.f32 %v621_v42, %v547_v5 }
 0x1e6   : > { %v692_v0 = vadd.f32 %v691_v41, %v614_v60 }
 0x1ea   : > { %v1832_v43 = vpop.f32.mrf.mxu2 }
 0x1eb   : > { %v1834_v44 = vpop.f32.mrf.mxu3 }
 0x1ec   : > { %v739_v48 = vpop.f32.mrf.mxu0  ;;  %v704_v53 = vadd.f32 %v1834_v44, %v638_v37 }
 0x1ed   : > { %v695_v45 = vpop.f32.mrf.mxu1  ;;  %v740_v61 = vadd.f32 %v739_v48, %v688_v56 }
 0x1ee   : > { %v696_v12 = vadd.f32 %v695_v45, %v622_v8 }
 0x1f2   : > { %v1836_v46 = vpop.f32.mrf.mxu2 }
 0x1f3   : > { %v1838_v47 = vpop.f32.mrf.mxu3 }
 0x1f4   : > { %v744_v54 = vpop.f32.mrf.mxu0 }
 0x1f5   : > { %v798_v49 = vpop.f32.mrf.mxu1  ;;  %v745_v9 = vadd.f32 %v744_v54, %v692_v0 }
 0x1f6   : > { %v799_v62 = vadd.f32 %v798_v49, %v740_v61 }
 0x1fa   : > { %v1840_v50 = vpop.f32.mrf.mxu2 }
 0x1fb   : > { %v1845_v52 = vpop.f32.mrf.mxu3 }
 0x1fc   : > { %v749_v63 = vpop.f32.mrf.mxu0 }
 0x1fd   : > { %v804_v55 = vpop.f32.mrf.mxu1  ;;  %v750_v21 = vadd.f32 %v749_v63, %v696_v12 }
 0x1fe   : > { %v805_v11 = vadd.f32 %v804_v55, %v745_v9  ;;  %v550_v55 = vld [vmem:[%s1966_s4 + $0x28] sm:$0xff] }
 0x202   : > { %v864_v57 = vpop.f32.mrf.mxu2 }
 0x203   : > { %v1850_v59 = vpop.f32.mrf.mxu3  ;;  %v865_v1 = vadd.f32 %v864_v57, %v799_v62 }
 0x204   : > { %v754_v13 = vpop.f32.mrf.mxu0 }
 0x205   : > { %v810_v2 = vpop.f32.mrf.mxu1  ;;  %v755_v36 = vadd.f32 %v754_v13, %v700_v30  ;;  %v551_v13 = vld [vmem:[%s1966_s4 + $0x30] sm:$0xff] }
 0x206   : > { %v811_v25 = vadd.f32 %v810_v2, %v750_v21 }
 0x20a   : > { %v868_v3 = vpop.f32.mrf.mxu2 }
 0x20b   : > { %v914_v6 = vpop.f32.mrf.mxu3  ;;  %v869_v14 = vadd.f32 %v868_v3, %v805_v11 }
 0x20c   : > { %v915_v7 = vadd.f32 %v914_v6, %v865_v1  ;;  %v759_v31 = vpop.f32.mrf.mxu0  ;;  %v646_v1 = vadd.f32 %v1832_v43, %v550_v55 }
 0x20d   : > { %v816_v17 = vpop.f32.mrf.mxu1  ;;  %v760_v58 = vadd.f32 %v759_v31, %v704_v53 }
 0x20e   : > { %v1267_v10 = vmul.f32 -1.442695, %v915_v7  ;;  %v817_v42 = vadd.f32 %v816_v17, %v755_v36  ;;  %v552_v36 = vld [vmem:[%s1966_s4 + $0x38] sm:$0xff] }
 0x210   : > { %1338 = vpow2.f32 %v1267_v10  ;;  %v708_v10 = vadd.f32 %v1838_v47, %v646_v1 }
 0x212   : > { %v872_v15 = vpop.f32.mrf.mxu2 }
 0x213   : > { %v918_v16 = vpop.f32.mrf.mxu3  ;;  %v873_v26 = vadd.f32 %v872_v15, %v811_v25 }
 0x214   : > { %v919_v18 = vadd.f32 %v918_v16, %v869_v14  ;;  %v764_v61 = vpop.f32.mrf.mxu0 }
 0x215   : > { %v822_v33 = vpop.f32.mrf.mxu1  ;;  %v765_v17 = vadd.f32 %v764_v61, %v708_v10 }
 0x216   : > { %v1339_v20 = vpop.eup %1338  ;;  %v1268_v22 = vmul.f32 -1.442695, %v919_v18  ;;  %v823_v44 = vadd.f32 %v822_v33, %v760_v58 }
 0x217   : > { %v969_v23 = vadd.f32 1.0, %v1339_v20 }
 0x218   : > { %1340 = vpow2.f32 %v1268_v22  ;;  %v654_v22 = vadd.f32 %v1836_v46, %v551_v13 }
 0x219   : > { %1342 = vrcp.f32 %v969_v23  ;;  %v988_v54 = vand.u32 2147483648, %v969_v23  ;;  %v986_v34 = vand.u32 2147483647, %v969_v23  ;;  %vm982_vm4 = vweird.f32 %v969_v23 }
 0x21a   : > { %v876_v27 = vpop.f32.mrf.mxu2  ;;  %v712_v46 = vadd.f32 %v1845_v52, %v654_v22 }
 0x21b   : > { %v922_v28 = vpop.f32.mrf.mxu3  ;;  %v877_v48 = vadd.f32 %v876_v27, %v817_v42  ;;  %v989_v3 = vor.u32 1.1754944e-38, %v988_v54  ;;  %vm987_vm6 = vcmp.eq.f32.partialorder %v986_v34, 8.507059e+37 }
 0x21c   : > { %v923_v32 = vadd.f32 %v922_v28, %v873_v26  ;;  %v769_v25 = vpop.f32.mrf.mxu0 }
 0x21d   : > { %v828_v4 = vpop.f32.mrf.mxu1  ;;  %v770_v37 = vadd.f32 %v769_v25, %v712_v46 }
 0x21e   : > { %v1341_v35 = vpop.eup %1340  ;;  %v1269_v38 = vmul.f32 -1.442695, %v923_v32  ;;  %v829_v47 = vadd.f32 %v828_v4, %v765_v17 }
 0x21f   : > { %v1343_v39 = vpop.eup %1342  ;;  %v970_v41 = vadd.f32 1.0, %v1341_v35 }
 0x220   : > { %1344 = vpow2.f32 %v1269_v38  ;;  %v978_v45 = vmul.f32 %v1343_v39, %v969_v23  ;;  %vm983_vm3 = vweird.f32 %v1343_v39 }
 0x221   : > { %1346 = vrcp.f32 %v970_v41  ;;  %vm984_vm5 = vmor %vm982_vm4, %vm983_vm3  ;;  %v1003_v12 = vand.u32 2147483648, %v970_v41  ;;  %v1001_v16 = vand.u32 2147483647, %v970_v41  ;;  %vm997_vm8 = vweird.f32 %v970_v41 }
 0x222   : > { %v880_v49 = vpop.f32.mrf.mxu2  ;;  %v979_v51 = vsub.f32 1.0, %v978_v45 }
 0x223   : > { %v926_v40 = vpop.f32.mrf.mxu3  ;;  %v881_v8 = vadd.f32 %v880_v49, %v823_v44  ;;  %v1004_v24 = vor.u32 1.1754944e-38, %v1003_v12  ;;  %vm1002_vm10 = vcmp.eq.f32.partialorder %v1001_v16, 8.507059e+37  ;;  %v662_v49 = vadd.f32 %v1840_v50, %v552_v36 }
 0x224   : > { %v927_v56 = vadd.f32 %v926_v40, %v877_v48  ;;  %v980_v57 = vmul.f32 %v1343_v39, %v979_v51 }
 0x225   : > { %v834_v29 = vpop.f32.mrf.mxu1 }
 0x226   : > { %v1345_v60 = vpop.eup %1344  ;;  %v1270_v62 = vmul.f32 -1.442695, %v927_v56  ;;  %v981_v63 = vadd.f32 %v1343_v39, %v980_v57  ;;  %v835_v51 = vadd.f32 %v834_v29, %v770_v37  ;;  %v774_v57 = vpop.f32.mrf.mxu0 }
 0x227   : > { %v1347_v0 = vpop.eup %1346  ;;  %v1867_v2 = vadd.f32 1.0, %v1345_v60  ;;  %v716_v60 = vadd.f32 %v1850_v59, %v662_v49 }
 0x228   : > { %1348 = vpow2.f32 %v1270_v62  ;;  %v985_v5 = vsel %vm984_vm5, %v1343_v39, %v981_v63  ;;  %v993_v6 = vmul.f32 %v1347_v0, %v970_v41  ;;  %vm998_vm7 = vweird.f32 %v1347_v0 }
 0x229   : > { %1350 = vrcp.f32 %v1867_v2  ;;  %v990_v7 = vsel %vm987_vm6, %v989_v3, %v985_v5  ;;  %vm999_vm9 = vmor %vm997_vm8, %vm998_vm7  ;;  %v1018_v35 = vand.u32 2147483648, %v1867_v2  ;;  %v1016_v39 = vand.u32 2147483647, %v1867_v2 }
 0x22a   : > { %1099 = vperm.xlu2 %1335, %v990_v7   ;;  %v994_v9 = vsub.f32 1.0, %v993_v6  ;;  %v884_v11 = vpop.f32.mrf.mxu2  ;;  %vm1012_vm12 = vweird.f32 %v1867_v2  ;;  %v775_v44 = vadd.f32 %v774_v57, %v716_v60 }
 0x22b   : > { %v930_v43 = vpop.f32.mrf.mxu3  ;;  %v885_v30 = vadd.f32 %v884_v11, %v829_v47  ;;  %v1019_v40 = vor.u32 1.1754944e-38, %v1018_v35  ;;  %vm1017_vm14 = vcmp.eq.f32.partialorder %v1016_v39, 8.507059e+37 }
 0x22c   : > { %v931_v14 = vadd.f32 %v930_v43, %v881_v8  ;;  %v995_v15 = vmul.f32 %v1347_v0, %v994_v9 }
 0x22d   : > { %v840_v62 = vpop.f32.mrf.mxu1 }
 0x22e   : > { %v1349_v18 = vpop.eup %1348  ;;  %v1271_v19 = vmul.f32 -1.442695, %v931_v14  ;;  %v996_v20 = vadd.f32 %v1347_v0, %v995_v15  ;;  %v841_v6 = vadd.f32 %v840_v62, %v775_v44  ;;  %v1372_v44 = vld [vmem:[%s1611_s25 + $0x30] sm:$0xff] }
 0x22f   : > { %v1351_v21 = vpop.eup %1350  ;;  %v1875_v23 = vadd.f32 1.0, %v1349_v18 }
 0x230   : > { %1352 = vpow2.f32 %v1271_v19  ;;  %v1000_v26 = vsel %vm999_vm9, %v1347_v0, %v996_v20  ;;  %v1008_v27 = vmul.f32 %v1351_v21, %v1867_v2  ;;  %vm1013_vm11 = vweird.f32 %v1351_v21 }
 0x231   : > { %1354 = vrcp.f32 %v1875_v23  ;;  %v1005_v28 = vsel %vm1002_vm10, %v1004_v24, %v1000_v26  ;;  %vm1014_vm13 = vmor %vm1012_vm12, %vm1013_vm11  ;;  %v1033_v50 = vand.u32 2147483648, %v1875_v23  ;;  %v1031_v1 = vand.u32 2147483647, %v1875_v23 }
 0x232   : > { %1104 = vperm.xlu0 %1336, %v1005_v28   ;;  %v1009_v31 = vsub.f32 1.0, %v1008_v27  ;;  %v888_v41 = vpop.f32.mrf.mxu2  ;;  %vm1027_vm0 = vweird.f32 %v1875_v23 }
 0x233   : > { %v934_v32 = vpop.f32.mrf.mxu3  ;;  %v889_v34 = vadd.f32 %v888_v41, %v835_v51  ;;  %v1034_v59 = vor.u32 1.1754944e-38, %v1033_v50  ;;  %vm1032_vm2 = vcmp.eq.f32.partialorder %v1031_v1, 8.507059e+37  ;;  %v1370_v50 = vld [vmem:[%s1611_s25] sm:$0xff] }
 0x234   : > { %v935_v33 = vadd.f32 %v934_v32, %v885_v30  ;;  %v1010_v38 = vmul.f32 %v1351_v21, %v1009_v31 }
 0x236   : > { %v1353_v42 = vpop.eup %1352  ;;  %v1272_v45 = vmul.f32 -1.442695, %v935_v33  ;;  %v1011_v48 = vadd.f32 %v1351_v21, %v1010_v38 }
 0x237   : > { %v1355_v52 = vpop.eup %1354  ;;  %v973_v53 = vadd.f32 1.0, %v1353_v42 }
 0x238   : > { %1356 = vpow2.f32 %v1272_v45  ;;  %v1015_v54 = vsel %vm1014_vm13, %v1351_v21, %v1011_v48  ;;  %v1023_v55 = vmul.f32 %v1355_v52, %v1875_v23  ;;  %vm1028_vm15 = vweird.f32 %v1355_v52 }
 0x239   : > { %1358 = vrcp.f32 %v973_v53  ;;  %v1020_v56 = vsel %vm1017_vm14, %v1019_v40, %v1015_v54  ;;  %vm1029_vm1 = vmor %vm1027_vm0, %vm1028_vm15  ;;  %v1048_v14 = vand.u32 2147483648, %v973_v53  ;;  %v1046_v17 = vand.u32 2147483647, %v973_v53 }
 0x23a   : > { %1109 = vperm.xlu1 %1337, %v1020_v56   ;;  %v1024_v58 = vsub.f32 1.0, %v1023_v55  ;;  %v892_v8 = vpop.f32.mrf.mxu2  ;;  %vm1042_vm4 = vweird.f32 %v973_v53 }
 0x23b   : > { %v938_v61 = vpop.f32.mrf.mxu3  ;;  %v893_v43 = vadd.f32 %v892_v8, %v841_v6  ;;  %v1049_v47 = vor.u32 1.1754944e-38, %v1048_v14  ;;  %vm1047_vm6 = vcmp.eq.f32.partialorder %v1046_v17, 8.507059e+37  ;;  %v1378_v14 = vld [vmem:[%s1611_s25 + $0x20] sm:$0xff] }
 0x23c   : > { %v939_v63 = vadd.f32 %v938_v61, %v889_v34  ;;  %v1025_v0 = vmul.f32 %v1355_v52, %v1024_v58 }
 0x23e   : > { %v1357_v2 = vpop.eup %1356  ;;  %v1273_v3 = vmul.f32 -1.442695, %v939_v63  ;;  %v1026_v4 = vadd.f32 %v1355_v52, %v1025_v0  ;;  %v1371_v63 = vld [vmem:[%s1611_s25 + $0x8] sm:$0xff] }
 0x23f   : > { %v1359_v5 = vpop.eup %1358  ;;  %v974_v7 = vadd.f32 1.0, %v1357_v2 }
 0x240   : > { %1360 = vpow2.f32 %v1273_v3  ;;  %v1030_v9 = vsel %vm1029_vm1, %v1355_v52, %v1026_v4  ;;  %v1038_v10 = vmul.f32 %v1359_v5, %v973_v53  ;;  %vm1043_vm3 = vweird.f32 %v1359_v5  ;;  %v1373_v3 = vld [vmem:[%s1611_s25 + $0x38] sm:$0xff] }
 0x241   : > { %1362 = vrcp.f32 %v974_v7  ;;  %v1035_v11 = vsel %vm1032_vm2, %v1034_v59, %v1030_v9  ;;  %vm1044_vm5 = vmor %vm1042_vm4, %vm1043_vm3  ;;  %v1063_v27 = vand.u32 2147483648, %v974_v7  ;;  %v1061_v29 = vand.u32 2147483647, %v974_v7  ;;  %v1375_v59 = vld [vmem:[%s1611_s25 + $0x18] sm:$0xff] }
 0x242   : > { %1114 = vperm.xlu2 %1335, %v1035_v11   ;;  %v1039_v12 = vsub.f32 1.0, %v1038_v10  ;;  %vm1057_vm8 = vweird.f32 %v974_v7  ;;  %v1376_v10 = vld [vmem:[%s1611_s25 + $0x40] sm:$0xff] }
 0x243   : > { %v942_v13 = vpop.f32.mrf.mxu3  ;;  %v1064_v35 = vor.u32 1.1754944e-38, %v1063_v27  ;;  %vm1062_vm10 = vcmp.eq.f32.partialorder %v1061_v29, 8.507059e+37 }
 0x244   : > { %v943_v15 = vadd.f32 %v942_v13, %v893_v43  ;;  %v1040_v16 = vmul.f32 %v1359_v5, %v1039_v12  ;;  %v1377_v43 = vld [vmem:[%s1611_s25 + $0x48] sm:$0xff] }
 0x246   : > { %v1361_v18 = vpop.eup %1360  ;;  %v1274_v19 = vmul.f32 -1.442695, %v943_v15  ;;  %v1041_v20 = vadd.f32 %v1359_v5, %v1040_v16  ;;  %v1379_v16 = vld [vmem:[%s1611_s25 + $0x28] sm:$0xff] }
 0x247   : > { %v1363_v21 = vpop.eup %1362  ;;  %v975_v22 = vadd.f32 1.0, %v1361_v18 }
 0x248   : > { %1364 = vpow2.f32 %v1274_v19  ;;  %v1045_v23 = vsel %vm1044_vm5, %v1359_v5, %v1041_v20  ;;  %v1053_v24 = vmul.f32 %v1363_v21, %v974_v7  ;;  %vm1058_vm7 = vweird.f32 %v1363_v21  ;;  %v1374_v7 = vld [vmem:[%s1611_s25 + $0x10] sm:$0xff]  ;;  %v1380_v19 = vld [vmem:[%s1611_s25 + $0x60] sm:$0xff] }
 0x249   : > { %1366 = vrcp.f32 %v975_v22  ;;  %v1050_v25 = vsel %vm1047_vm6, %v1049_v47, %v1045_v23  ;;  %vm1059_vm9 = vmor %vm1057_vm8, %vm1058_vm7  ;;  %v1078_v37 = vand.u32 2147483648, %v975_v22  ;;  %v1076_v42 = vand.u32 2147483647, %v975_v22  ;;  %v1382_v23 = vld [vmem:[%s1611_s25 + $0x50] sm:$0xff] }
 0x24a   : > { %1119 = vperm.xlu2 %1335, %v1050_v25   ;;  %v1054_v26 = vsub.f32 1.0, %v1053_v24  ;;  %vm1072_vm12 = vweird.f32 %v975_v22  ;;  %v1383_v25 = vld [vmem:[%s1611_s25 + $0x58] sm:$0xff] }
 0x24b   : > { %v1079_v52 = vor.u32 1.1754944e-38, %v1078_v37  ;;  %vm1077_vm14 = vcmp.eq.f32.partialorder %v1076_v42, 8.507059e+37 }
 0x24c   : > { %v1055_v28 = vmul.f32 %v1363_v21, %v1054_v26 }
 0x24e   : > { %v1365_v30 = vpop.eup %1364  ;;  %v1056_v31 = vadd.f32 %v1363_v21, %v1055_v28  ;;  %v1384_v28 = vld [vmem:[%s1611_s25 + $0x70] sm:$0xff] }
 0x24f   : > { %v1367_v46 = vpop.eup %1366  ;;  %v976_v32 = vadd.f32 1.0, %v1365_v30  ;;  %v1385_v30 = vld [vmem:[%s1611_s25 + $0x78] sm:$0xff] }
 0x250   : > { %v1060_v36 = vsel %vm1059_vm9, %v1363_v21, %v1056_v31  ;;  %v1068_v33 = vmul.f32 %v1367_v46, %v975_v22  ;;  %vm1073_vm11 = vweird.f32 %v1367_v46  ;;  %v1381_v21 = vld [vmem:[%s1611_s25 + $0x68] sm:$0xff] }
 0x251   : > { %1368 = vrcp.f32 %v976_v32  ;;  %v1065_v38 = vsel %vm1062_vm10, %v1064_v35, %v1060_v36  ;;  %vm1074_vm13 = vmor %vm1072_vm12, %vm1073_vm11  ;;  %v1093_v54 = vand.u32 2147483648, %v976_v32  ;;  %v1091_v56 = vand.u32 2147483647, %v976_v32 }
 0x252   : > { %1124 = vperm.xlu1 %1337, %v1065_v38   ;;  %v1069_v39 = vsub.f32 1.0, %v1068_v33  ;;  %vm1087_vm0 = vweird.f32 %v976_v32 }
 0x253   : > { %v1094_v34 = vor.u32 1.1754944e-38, %v1093_v54  ;;  %vm1092_vm2 = vcmp.eq.f32.partialorder %v1091_v56, 8.507059e+37 }
 0x254   : > { %v1070_v41 = vmul.f32 %v1367_v46, %v1069_v39 }
 0x256   : > { %v1071_v45 = vadd.f32 %v1367_v46, %v1070_v41 }
 0x257   : > { %v1369_v48 = vpop.eup %1368 }
 0x258   : > { %v1075_v49 = vsel %vm1074_vm13, %v1367_v46, %v1071_v45  ;;  %v1083_v51 = vmul.f32 %v1369_v48, %v976_v32  ;;  %vm1088_vm15 = vweird.f32 %v1369_v48 }
 0x259   : > { %v1080_v53 = vsel %vm1077_vm14, %v1079_v52, %v1075_v49  ;;  %vm1089_vm1 = vmor %vm1087_vm0, %vm1088_vm15 }
 0x25a   : > { %1129 = vperm.xlu2 %1335, %v1080_v53   ;;  %v1084_v40 = vsub.f32 1.0, %v1083_v51 }
 0x25c   : > { %v1085_v55 = vmul.f32 %v1369_v48, %v1084_v40 }
 0x25e   : > { %v1086_v57 = vadd.f32 %v1369_v48, %v1085_v55 }
 0x260   : > { %v1090_v58 = vsel %vm1089_vm1, %v1369_v48, %v1086_v57 }
 0x261   : > { %v1095_v60 = vsel %vm1092_vm2, %v1094_v34, %v1090_v58 }
 0x262   : > { %1134 = vperm.xlu1 %1337, %v1095_v60  }
 0x284   : > { %v1100_v61 = vpop.permute.xlu2 %1099 }
 0x285   : > { %v1137_v62 = vmul.f32 %v1370_v50, %v1100_v61  ;;  %v1138_v0 = vmul.f32 %v1371_v63, %v1100_v61 }
 0x287   : > { %1153 = vst [vmem:[%s1896_s7] sm:$0xff] %v1137_v62 }
 0x288   : > { %1154 = vst [vmem:[%s1896_s7 + $0x8] sm:$0xff] %v1138_v0 }
 0x29c   : > { %v1115_v1 = vpop.permute.xlu2 %1114 }
 0x29d   : > { %v1143_v2 = vmul.f32 %v1372_v44, %v1115_v1  ;;  %v1144_v4 = vmul.f32 %v1373_v3, %v1115_v1 }
 0x29f   : > { %1159 = vst [vmem:[%s1896_s7 + $0x30] sm:$0xff] %v1143_v2 }
 0x2a0   : > { %1160 = vst [vmem:[%s1896_s7 + $0x38] sm:$0xff] %v1144_v4 }
 0x2a4   : > { %v1105_v5 = vpop.permute.xlu0 %1104  ;;  %v1120_v6 = vpop.permute.xlu2 %1119 }
 0x2a5   : > { %v1139_v8 = vmul.f32 %v1374_v7, %v1105_v5  ;;  %v1140_v9 = vmul.f32 %v1375_v59, %v1105_v5  ;;  %v1145_v11 = vmul.f32 %v1376_v10, %v1120_v6  ;;  %v1146_v12 = vmul.f32 %v1377_v43, %v1120_v6 }
 0x2a7   : > { %1155 = vst [vmem:[%s1896_s7 + $0x10] sm:$0xff] %v1139_v8 }
 0x2a8   : > { %1156 = vst [vmem:[%s1896_s7 + $0x18] sm:$0xff] %v1140_v9 }
 0x2a9   : > { %1161 = vst [vmem:[%s1896_s7 + $0x40] sm:$0xff] %v1145_v11 }
 0x2aa   : > { %1162 = vst [vmem:[%s1896_s7 + $0x48] sm:$0xff] %v1146_v12 }
 0x2ac   : > { %v1110_v13 = vpop.permute.xlu1 %1109 }
 0x2ad   : > { %v1141_v15 = vmul.f32 %v1378_v14, %v1110_v13  ;;  %v1142_v17 = vmul.f32 %v1379_v16, %v1110_v13 }
 0x2af   : > { %1157 = vst [vmem:[%s1896_s7 + $0x20] sm:$0xff] %v1141_v15 }
 0x2b0   : > { %1158 = vst [vmem:[%s1896_s7 + $0x28] sm:$0xff] %v1142_v17 }
 0x2b4   : > { %v1130_v18 = vpop.permute.xlu2 %1129 }
 0x2b5   : > { %v1149_v20 = vmul.f32 %v1380_v19, %v1130_v18  ;;  %v1150_v22 = vmul.f32 %v1381_v21, %v1130_v18 }
 0x2b7   : > { %1165 = vst [vmem:[%s1896_s7 + $0x60] sm:$0xff] %v1149_v20 }
 0x2b8   : > { %1166 = vst [vmem:[%s1896_s7 + $0x68] sm:$0xff] %v1150_v22 }
 0x2c4   : > { %v1125_v47 = vpop.permute.xlu1 %1124 }
 0x2c5   : > { %v1147_v24 = vmul.f32 %v1382_v23, %v1125_v47  ;;  %v1148_v26 = vmul.f32 %v1383_v25, %v1125_v47 }
 0x2c7   : > { %1163 = vst [vmem:[%s1896_s7 + $0x50] sm:$0xff] %v1147_v24 }
 0x2c8   : > { %1164 = vst [vmem:[%s1896_s7 + $0x58] sm:$0xff] %v1148_v26 }
 0x2d4   : > { %v1135_v27 = vpop.permute.xlu1 %1134 }
 0x2d5   : > { %v1151_v29 = vmul.f32 %v1384_v28, %v1135_v27  ;;  %v1152_v31 = vmul.f32 %v1385_v30, %v1135_v27 }
 0x2d7   : > { %1167 = vst [vmem:[%s1896_s7 + $0x70] sm:$0xff] %v1151_v29 }
 0x2d8   : > { %1168 = vst [vmem:[%s1896_s7 + $0x78] sm:$0xff] %v1152_v31 }
 0x2d9   : > { %1443 = shalt.err (!%p1440_p4)
}
 0x2da   : > { %s1487_s12 = smov 256   ;;  %s1488_s25 = smov 16  }
 0x2db   : > { %1286 = dma.vmem_to_hbm [thread:$0]  (%p1569_p11), %s1183_s13, 2048, %s1185_s15, %s1170_s16, %s1487_s12, %s1487_s12, %s1488_s25  }
 0x2dc PF: > { %s1199_s7 = sand.u32 1, %s1470_s18   ;;  %p1973_p7 = scmp.ge.s32.totalorder %s1482_s21, 2 }
 0x2dd   : > { %s1200_s14 = scalar_lea.sflag [#allocation4], %s1199_s7 }
 0x2de   : > { %p1293_p5 = pnand %p1973_p7, %p1573_p12 }
 0x2e0   : > { %p1294_p8 = pneg %p1293_p5 }
 0x2e2   : > { %1465 = dma.done.wait (%p1294_p8), %s1200_s14, 2048  }
 0x2e3   : > { %1467 = vsyncadd (%p1294_p8), %s1200_s14, 4294965248  ;;  %p18_p10 = scmp.ge.s32.totalorder %s1544_s24, 4   ;;  %s1974_s18 = smov %s1474_s19 }
 0x2e4   : > { %s1975_s19 = smov %s1478_s20  ;;  %s1976_s20 = smov %s1556_s27 }
 0x2e5   : > { %s1977_s21 = smov %s1544_s24  ;;  %20 = sbr.rel (!%p18_p10) target bundleno = 5 (0x5), region = 85 }
 0x2ea   :  { %1206 = vsyncpa [#allocation3], 1 }
 0x2eb   :  { %1208 = vsyncpa [#allocation3 + $0x1], 1 }
 0x2ec   :  { %1209 = vsyncpa [#allocation4], 1 }
 0x2ed   :  { %1211 = vsyncpa [#allocation4 + $0x1], 1 }

</bundles_post_ra>
